<compile_context>
chip_gen: v5e
topology: v5e:2x2
jax: 0.10.0
libtpu: 0.0.40
codegen_flags: <defaults>
</compile_context>

<pallas_src>
import jax
import jax.numpy as jnp
from jax.experimental import pallas as pl
from jax.experimental.pallas import tpu as pltpu


def _sse_kernel(x_ref, w_ref, b_ref, o_ref):
    # x_ref: (1, C, T) VMEM block   w_ref: (C, 1) VMEM f32   b_ref: (1,) SMEM f32
    x = x_ref[0]                                   # (C, T), input dtype
    w = w_ref[...]                                 # (C, 1) f32
    b = b_ref[0]                                   # scalar f32

    # 1x1 conv over channels == per-pixel weighted sum across the C (sublane)
    # axis.  Accumulate in f32.  Stays on VPU/XLU — an MXU matmul for a single
    # output row would waste >99% of the array and add drain latency.
    logits = jnp.sum(x.astype(jnp.float32) * w, axis=0, keepdims=True) + b  # (1, T)
    gate = jax.nn.sigmoid(logits)                                           # (1, T)

    # Broadcast-multiply the per-pixel gate over channels.  Keep x in its
    # native dtype so bf16 inputs don't pay for a full f32 tile copy.
    o_ref[0] = (x * gate.astype(x.dtype)).astype(o_ref.dtype)


def _choose_hw_tile(hw: int) -> int:
    """Pick a lane-dense spatial tile that evenly divides H*W."""
    for t in (2048, 1024, 512, 256, 128):
        if hw % t == 0:
            return t
    # Fall back to the full spatial extent (block dim == array dim is always
    # legal, even when not a multiple of 128).
    return hw


def sse_block(x, weight, bias):
    """x: (N, C, H, W); weight: (C,) conv1x1 weights; bias: (1,) bias."""
    N, C, H, W = x.shape
    HW = H * W
    hw_tile = _choose_hw_tile(HW)
    num_tiles = pl.cdiv(HW, hw_tile)

    x_flat = x.reshape(N, C, HW)                  # free for contiguous NCHW
    w2 = weight.reshape(C, 1).astype(jnp.float32)
    b1 = bias.reshape(1).astype(jnp.float32)

    itemsize = jnp.dtype(x.dtype).itemsize
    tile_bytes = C * hw_tile * itemsize
    # ~2x(in tile) + 2x(out tile) from double buffering, plus headroom;
    # cap well below v7x's 64 MiB physical VMEM.
    vmem_limit = int(min(max(6 * tile_bytes + (2 << 20), 16 << 20), 48 << 20))

    cost = pl.CostEstimate(
        flops=3 * N * C * HW,                     # reduce mul+add, gate mul
        transcendentals=N * HW,                   # sigmoid per pixel
        bytes_accessed=2 * N * C * HW * itemsize + C * 4 + 4,
    )

    out_flat = pl.pallas_call(
        _sse_kernel,
        out_shape=jax.ShapeDtypeStruct((N, C, HW), x.dtype),
        grid_spec=pltpu.PrefetchScalarGridSpec(
            num_scalar_prefetch=0,
            grid=(N, num_tiles),
            in_specs=[
                pl.BlockSpec((1, C, hw_tile), lambda n, t: (n, 0, t)),
                pl.BlockSpec((C, 1), lambda n, t: (0, 0)),
                pl.BlockSpec(memory_space=pltpu.SMEM),
            ],
            out_specs=pl.BlockSpec((1, C, hw_tile), lambda n, t: (n, 0, t)),
        ),
        compiler_params=pltpu.CompilerParams(
            dimension_semantics=("parallel", "parallel"),
            vmem_limit_bytes=vmem_limit,
        ),
        cost_estimate=cost,
    )(x_flat, w2, b1)

    return out_flat.reshape(N, C, H, W)


def sse_block_ref(x, weight, bias):
    # Pure-JAX reference (matches PyTorch Conv2d(C,1,1) + Sigmoid + multiply).
    logits = jnp.einsum("nchw,c->nhw", x.astype(jnp.float32),
                        weight.astype(jnp.float32)) + bias[0]
    gate = jax.nn.sigmoid(logits)[:, None, :, :]
    return (x.astype(jnp.float32) * gate).astype(x.dtype)


if __name__ == "__main__":
    key = jax.random.PRNGKey(0)
    kx, kw, kb = jax.random.split(key, 3)

    N, C, H, W = 2, 4, 16, 16
    x = jax.random.normal(kx, (N, C, H, W), dtype=jnp.float32)

    # Deterministic synthetic parameters for Conv2d(C, 1, kernel_size=1):
    # weight shape (1, C, 1, 1) -> stored as (C,); bias shape (1,).
    fan_in = C  # 1x1 kernel
    bound = 1.0 / jnp.sqrt(fan_in)
    weight = jax.random.uniform(kw, (C,), minval=-bound, maxval=bound,
                                dtype=jnp.float32)
    bias = jax.random.uniform(kb, (1,), minval=-bound, maxval=bound,
                              dtype=jnp.float32)

    out = sse_block(x, weight, bias)
    jax.block_until_ready(out)

    ref = sse_block_ref(x, weight, bias)
    assert out.shape == (N, C, H, W)
    assert jnp.allclose(out, ref, atol=1e-5, rtol=1e-5)

    print("KERNEL_OK")
</pallas_src>

<mosaic_0001>
module attributes {stable_mosaic.version = 11 : i64} {
  func.func @_sse_kernel(%arg0: i32, %arg1: i32, %arg2: memref<1x4x256xf32, #tpu.memory_space<vmem>>, %arg3: memref<4x1xf32, #tpu.memory_space<vmem>>, %arg4: memref<1xf32, #tpu.memory_space<smem>>, %arg5: memref<1x4x256xf32, #tpu.memory_space<vmem>>) attributes {dimension_semantics = [#tpu.dimension_semantics<parallel>, #tpu.dimension_semantics<parallel>], iteration_bounds = array<i64: 2, 1>, scalar_prefetch = 0 : i64, scratch_operands = 0 : i64, tpu.core_type = #tpu.core_type<tc>, window_params = [{transform_indices = @transform_0, window_bounds = array<i64: 1, 4, 256>}, {pipeline_mode = #tpu.pipeline_mode<synchronous>, transform_indices = @transform_1, window_bounds = array<i64: 4, 1>}, {transform_indices = @transform_2, window_bounds = array<i64: 1>}, {transform_indices = @transform_3, window_bounds = array<i64: 1, 4, 256>}]} {
    %c0 = arith.constant 0 : index
    %c0_0 = arith.constant 0 : index
    %c0_1 = arith.constant 0 : index
    %0 = vector.load %arg2[%c0, %c0_0, %c0_1] : memref<1x4x256xf32, #tpu.memory_space<vmem>>, vector<1x4x256xf32>
    %1 = vector.shape_cast %0 : vector<1x4x256xf32> to vector<4x256xf32>
    %c0_2 = arith.constant 0 : index
    %c0_3 = arith.constant 0 : index
    %2 = vector.load %arg3[%c0_2, %c0_3] : memref<4x1xf32, #tpu.memory_space<vmem>>, vector<4x1xf32>
    %c0_4 = arith.constant 0 : index
    %3 = memref.load %arg4[%c0_4] : memref<1xf32, #tpu.memory_space<smem>>
    %4 = vector.broadcast %2 : vector<4x1xf32> to vector<4x256xf32>
    %5 = arith.mulf %1, %4 : vector<4x256xf32>
    %cst = arith.constant dense<0.000000e+00> : vector<256xf32>
    %6 = vector.multi_reduction <add>, %5, %cst [0] : vector<4x256xf32> to vector<256xf32>
    %7 = vector.shape_cast %6 : vector<256xf32> to vector<1x256xf32>
    %8 = vector.broadcast %3 : f32 to vector<1x256xf32>
    %9 = arith.addf %7, %8 : vector<1x256xf32>
    %10 = arith.negf %9 : vector<1x256xf32>
    %11 = math.exp %10 : vector<1x256xf32>
    %cst_5 = arith.constant 1.000000e+00 : f32
    %12 = vector.broadcast %cst_5 : f32 to vector<1x256xf32>
    %13 = arith.addf %12, %11 : vector<1x256xf32>
    %14 = arith.divf %12, %13 : vector<1x256xf32>
    %15 = vector.broadcast %14 : vector<1x256xf32> to vector<4x256xf32>
    %16 = arith.mulf %1, %15 : vector<4x256xf32>
    %c0_6 = arith.constant 0 : index
    %c0_7 = arith.constant 0 : index
    %c0_8 = arith.constant 0 : index
    %17 = vector.load %arg5[%c0_6, %c0_7, %c0_8] : memref<1x4x256xf32, #tpu.memory_space<vmem>>, vector<1x4x256xf32>
    %18 = vector.shape_cast %17 : vector<1x4x256xf32> to vector<4x256xf32>
    %19 = vector.shape_cast %16 : vector<4x256xf32> to vector<1x4x256xf32>
    tpu.vector_store %arg5[%c0_6, %c0_7, %c0_8], %19 {strides = array<i32>} : memref<1x4x256xf32, #tpu.memory_space<vmem>>, vector<1x4x256xf32>,
    return
  }
  func.func @transform_0(%arg0: i32, %arg1: i32) -> (i32, i32, i32) {
    %c0_i32 = arith.constant 0 : i32
    %c0_i32_0 = arith.constant 0 : i32
    return %arg0, %c0_i32, %arg1 : i32, i32, i32
  }
  func.func @transform_1(%arg0: i32, %arg1: i32) -> (i32, i32) {
    %c0_i32 = arith.constant 0 : i32
    %c0_i32_0 = arith.constant 0 : i32
    %c0_i32_1 = arith.constant 0 : i32
    return %c0_i32, %c0_i32_0 : i32, i32
  }
  func.func @transform_2(%arg0: i32, %arg1: i32) -> i32 {
    %c0_i32 = arith.constant 0 : i32
    %c0_i32_0 = arith.constant 0 : i32
    return %c0_i32 : i32
  }
  func.func @transform_3(%arg0: i32, %arg1: i32) -> (i32, i32, i32) {
    %c0_i32 = arith.constant 0 : i32
    %c0_i32_0 = arith.constant 0 : i32
    return %arg0, %c0_i32, %arg1 : i32, i32, i32
  }
}

</mosaic_0001>

<bundles_post_ra>
// kernel: tpu_custom_call.1
= control target key start
LH: loop header
LB: loop body
LE: loop exit
PB: predicated region body
PF: predicated region fallthrough
CT: control target
= control target key end

     0   :  { %s766_s0 = inlined_call_operand.hbm [shape: f32[2,4,256], index: 0, kind: input, shape index: {}]   ;;  %s767_s1 = inlined_call_operand.vmem [shape: f32[4,1], index: 1, kind: input, shape index: {}]   ;;  %s768_s2 = inlined_call_operand.<no memory space> [shape: f32[1], index: 2, kind: input, shape index: {}]   ;;  %s769_s3 = inlined_call_operand.hbm [shape: f32[2,4,256], index: 3, kind: output, shape index: {}]  }
   0x1   :  { %8 = sst [smem:[#allocation2]] %s768_s2 }
   0x2   :  { %9 = vsyncpa [#allocation4], 0 }
   0x3   :  { %11 = vsyncpa [#allocation4 + $0x1], 0 }
   0x4   :  { %12 = vsyncpa [#allocation5], 0 }
   0x5   :  { %14 = vsyncpa [#allocation5 + $0x1], 0  ;;  %s626_s14 = smov 0   ;;  %s628_s15 = smov 0  }
   0x6   :  { %s630_s16 = smov 0   ;;  %s632_s17 = smov 0  }
   0x7   :  { %s634_s18 = smov 0   ;;  %s636_s19 = smov 0  }
   0x8 LB: > { %s395_s2 = sadd.s32 4294967295, %s599_s19   ;;  %s396_s20 = sadd.s32 4294967294, %s599_s19   ;;  %s599_s19 = sphi %s636_s19, %s20_s19   ;;  %s595_s18 = sphi %s634_s18, %s780_s18   ;;  %s591_s17 = sphi %s632_s17, %s779_s17   ;;  %s587_s16 = sphi %s630_s16, %s778_s16   ;;  %s583_s15 = sphi %s628_s15, %s777_s15   ;;  %s579_s14 = sphi %s626_s14, %s776_s14  }
   0x9   : > { %s32_s21 = sadd.s32 1, %s595_s18  ;;  %s41_s22 = sadd.s32 1, %s587_s16 }
   0xa   : > { %p34_p0 = scmp.ge.s32.totalorder %s32_s21, 2  ;;  %p48_p1 = scmp.ne.s32.totalorder %s587_s16, %s583_s15 }
   0xb   : > { %p49_p2 = scmp.eq.s32.totalorder %s599_s19, 0  ;;  %p54_p3 = scmp.ne.s32.totalorder %s583_s15, %s579_s14 }
   0xc   : > { %s782_s21 = smov (%p34_p0, %s32_s21), 0  ;;  %p55_p5 = scmp.eq.s32.totalorder %s395_s2, 0 }
   0xd   : > { %p667_p4 = por %p49_p2, %p48_p1  ;;  %s36_s24 = ssub.s32 %s595_s18, %s782_s21 }
   0xe   : > { %p122_p6 = scmp.eq.s32.totalorder %s395_s2, 1  ;;  %p39_p7 = scmp.eq.s32.totalorder %s36_s24, 0 }
   0xf   : > { %p673_p8 = por %p55_p5, %p54_p3  ;;  %p128_p10 = scmp.eq.s32.totalorder %s396_s20, 1 }
  0x10   : > { %p677_p9 = por %p122_p6, %p48_p1  ;;  %p398_p12 = scmp.ge.s32.totalorder %s599_s19, 2 }
  0x11   : > { %s682_s27 = scalar_select %p39_p7, %s587_s16, %s41_s22  }
  0x12   : > { %p684_p11 = por %p128_p10, %p54_p3  ;;  %p426_p13 = scmp.lt.s32.totalorder %s599_s19, 2 }
  0x13   : > { %s154_s29 = sand.u32 1, %s587_s16   ;;  %s412_s4 = sshll.u32 %s595_s18, 3 }
  0x14   : > { %s399_s30 = sshll.u32 %s154_s29, 3  ;;  %s165_s7 = scalar_lea.hbm %s766_s0, %s412_s4 }
  0x15   : > { %s158_s8 = scalar_lea.vmem [#allocation3], %s399_s30  ;;  %s167_s10 = sshll.u32 %s165_s7, 4  ;;  %s168_s10 = int_to_ptr.hbm [resolvable:$true] %s167_s10 }
  0x16   : > { %s169_s9 = sshll.u32 %s158_s8, 4  ;;  %p419_p0 = pnand %p426_p13, %p667_p4  ;;  %s170_s9 = int_to_ptr.vmem [resolvable:$true] %s169_s9 }
  0x17   : > { %p402_p1 = scmp.ge.s32.totalorder %s599_s19, 1  ;;  %p174_p2 = scmp.lt.s32.totalorder %s599_s19, 3 }
  0x18   : > { %s155_s11 = scalar_lea.sflag [#allocation4], %s154_s29 }
  0x19   : > { %421 = dma.hbm_to_vmem [thread:$0]  (!%p419_p0), %s168_s10, 128, %s170_s9, %s155_s11  }
  0x1a   : > { %p175_p3 = pnand %p402_p1, %p174_p2 }
  0x1b   : > { %s700_s12 = sand.u32 (!%p175_p3), 1, %s583_s15  }
  0x1c   : > { %178 = sbr.rel (%p175_p3) target bundleno = 215 (0xd7), region = 32  ;;  %s403_s13 = sshll.u32 (!%p175_p3), %s700_s12, 3 }
  0x1d   : > { %s181_s2 = scalar_lea.sflag (!%p175_p3), [#allocation4], %s700_s12  ;;  %s184_s20 = scalar_lea.vmem (!%p175_p3), [#allocation3], %s403_s13 }
  0x21   : > { %570 = dma.done.wait (%p673_p8), %s181_s2, 128  }
  0x22   : > { %572 = vsyncadd (%p673_p8), %s181_s2, 4294967168  ;;  %v601_v0 = vmov 0   ;;  %v211_v1 = vld [vmem:[%s767_s1] sm:$0xf]  ;;  %v602_v2 = vmov 839922192  }
  0x23   : > { %478 = vset.pattern.permute.xlu0 %v601_v0  ;;  %v218_v3 = vunpack.c.l.s4 %v602_v2  ;;  %v713_v6 = vld [vmem:[%s184_s20] sm:$0xff]  ;;  %vm229_vm0 = vcmask 1043456   ;;  %s212_s24 = sld [smem:[#allocation2]]  ;;  %s413_s25 = sshll.u32 %s591_s17, 3 }
  0x24   : > { %215 = vperm.xlu0 %478, %v211_v1   ;;  %s306_s4 = scalar_lea.hbm %s769_s3, %s413_s25  ;;  %s207_s17 = scalar_lea.vmem [#allocation6], %s403_s13 }
  0x25   : > { %v219_v4 = vunpack.c.0.s8 %v218_v3  ;;  %s308_s5 = sshll.u32 %s207_s17, 4  ;;  %s310_s6 = sshll.u32 %s306_s4, 4  ;;  %s309_s5 = int_to_ptr.vmem [resolvable:$true] %s308_s5  ;;  %s311_s6 = int_to_ptr.hbm [resolvable:$true] %s310_s6 }
  0x26   : > { %s293_s7 = scalar_lea.sflag [#allocation5], %s700_s12  ;;  %s531_s8 = sshra.s32 %s311_s6, 4  ;;  %s532_s8 = int_to_ptr.hbm [resolvable:$true] %s531_s8 }
  0x27   : > { %s533_s9 = scalar_lea.hbm %s532_s8, 8  ;;  %s537_s13 = scalar_lea.hbm %s769_s3, 16 }
  0x28   : > { %p534_p4 = scmp.ne.s32.totalorder %s532_s8, %s533_s9  ;;  %p538_p7 = scmp.lt.s32.totalorder %s532_s8, %s769_s3 }
  0x29   : > { %v244_v23 = vstv %s212_s24  ;;  %p539_p8 = scmp.lt.s32.totalorder %s537_s13, %s533_s9 }
  0x2a   : > { %p535_p5 = pnand %p534_p4, %p677_p9 }
  0x2b   : > { %p540_p10 = por %p539_p8, %p538_p7 }
  0x2c   : > { %p536_p6 = pneg %p535_p5 }
  0x2e   : > { %p541_p13 = pnand %p540_p10, %p536_p6 }
  0x96   : > { %v216_v5 = vpop.permute.xlu0 %215 }
  0x97   : > { %v220_v7 = vperm.slane %v216_v5, %v219_v4 }
  0x99   : > { %v222_v8 = vmul.f32 %v220_v7, %v713_v6 }
  0x9b   : > { %224 = vst [vmem:[#allocation1] ss:$2 sm:$0xff] %v222_v8 }
  0xa2   : > { %v225_v9 = vld.sshfl [vmem:[#allocation1] sm:$0xff pattern:$0x75316420]  ;;  %v226_v10 = vld.sshfl [vmem:[#allocation1 + $0x8] sm:$0xff pattern:$0x75316420] }
  0xa3   : > { %v230_v11 = vsel %vm229_vm0, %v225_v9, 0.0  ;;  %v237_v12 = vsel %vm229_vm0, %v226_v10, 0.0 }
  0xa4   : > { %v231_v13 = vrot.slane %v230_v11, 4  ;;  %v238_v14 = vrot.slane %v237_v12, 4 }
  0xa6   : > { %v232_v15 = vadd.f32 %v231_v13, %v230_v11  ;;  %v239_v16 = vadd.f32 %v238_v14, %v237_v12 }
  0xa8   : > { %v233_v17 = vrot.slane %v232_v15, 2  ;;  %v240_v18 = vrot.slane %v239_v16, 2 }
  0xaa   : > { %v234_v19 = vadd.f32 %v233_v17, %v232_v15  ;;  %v241_v20 = vadd.f32 %v240_v18, %v239_v16 }
  0xac   : > { %v235_v21 = vrot.slane %v234_v19, 1  ;;  %v242_v22 = vrot.slane %v241_v20, 1 }
  0xae   : > { %v236_v24 = vadd.f32 %v235_v21, %v234_v19  ;;  %v243_v25 = vadd.f32 %v242_v22, %v241_v20 }
  0xb0   : > { %v245_v26 = vadd.f32 %v244_v23, %v236_v24  ;;  %v246_v27 = vadd.f32 %v244_v23, %v243_v25 }
  0xb2   : > { %v405_v28 = vmul.f32 -1.442695, %v245_v26  ;;  %v406_v29 = vmul.f32 -1.442695, %v246_v27 }
  0xb4   : > { %479 = vpow2.f32 %v405_v28 }
  0xb5   : > { %481 = vpow2.f32 %v406_v29 }
  0xba   : > { %v480_v30 = vpop.eup %479 }
  0xbb   : > { %v482_v31 = vpop.eup %481  ;;  %v253_v32 = vadd.f32 1.0, %v480_v30 }
  0xbc   : > { %v254_v33 = vadd.f32 1.0, %v482_v31 }
  0xbd   : > { %483 = vrcp.f32 %v253_v32  ;;  %vm260_vm3 = vweird.f32 %v253_v32  ;;  %v266_v45 = vand.u32 2147483648, %v253_v32  ;;  %v264_v47 = vand.u32 2147483647, %v253_v32 }
  0xbe   : > { %485 = vrcp.f32 %v254_v33  ;;  %v281_v41 = vand.u32 2147483648, %v254_v33  ;;  %v279_v43 = vand.u32 2147483647, %v254_v33  ;;  %vm275_vm5 = vweird.f32 %v254_v33 }
  0xbf   : > { %v267_v52 = vor.u32 1.1754944e-38, %v266_v45  ;;  %vm265_vm8 = vcmp.eq.f32.partialorder %v264_v47, 8.507059e+37 }
  0xc0   : > { %v282_v49 = vor.u32 1.1754944e-38, %v281_v41  ;;  %vm280_vm7 = vcmp.eq.f32.partialorder %v279_v43, 8.507059e+37 }
  0xc3   : > { %v484_v34 = vpop.eup %483 }
  0xc4   : > { %v486_v35 = vpop.eup %485  ;;  %v256_v36 = vmul.f32 %v484_v34, %v253_v32  ;;  %vm261_vm1 = vweird.f32 %v484_v34 }
  0xc5   : > { %v271_v37 = vmul.f32 %v486_v35, %v254_v33  ;;  %vm276_vm2 = vweird.f32 %v486_v35  ;;  %vm719_vm4 = vmor %vm260_vm3, %vm261_vm1 }
  0xc6   : > { %v257_v38 = vsub.f32 1.0, %v256_v36  ;;  %vm277_vm6 = vmor %vm275_vm5, %vm276_vm2 }
  0xc7   : > { %v272_v39 = vsub.f32 1.0, %v271_v37 }
  0xc8   : > { %v258_v40 = vmul.f32 %v484_v34, %v257_v38 }
  0xc9   : > { %v273_v42 = vmul.f32 %v486_v35, %v272_v39 }
  0xca   : > { %v259_v44 = vadd.f32 %v484_v34, %v258_v40 }
  0xcb   : > { %v274_v48 = vadd.f32 %v486_v35, %v273_v42 }
  0xcc   : > { %v263_v50 = vsel %vm719_vm4, %v484_v34, %v259_v44 }
  0xcd   : > { %v278_v51 = vsel %vm277_vm6, %v486_v35, %v274_v48  ;;  %v268_v55 = vsel %vm265_vm8, %v267_v52, %v263_v50 }
  0xce   : > { %v283_v53 = vsel %vm280_vm7, %v282_v49, %v278_v51 }
  0xcf   : > { %v287_v54 = vrot.slane %v283_v53, 4 }
  0xd1   : > { %v288_v56 = vsel %vm229_vm0, %v268_v55, %v287_v54 }
  0xd2   : > { %v290_v57 = vmul.f32 %v288_v56, %v713_v6 }
  0xd4   : > { %291 = vst [vmem:[%s207_s17] sm:$0xff] %v290_v57 }
  0xd5   : > { %544 = shalt.err (!%p541_p13)
}
  0xd6   : > { %416 = dma.vmem_to_hbm [thread:$0]  (%p677_p9), %s309_s5, 128, %s311_s6, %s293_s7  }
  0xd7 PF: > { %s322_s12 = sand.u32 1, %s579_s14   ;;  %p423_p0 = pnand %p398_p12, %p684_p11 }
  0xd8   : > { %s323_s22 = scalar_lea.sflag [#allocation5], %s322_s12 }
  0xd9   : > { %p424_p1 = pneg %p423_p0 }
  0xdb   : > { %574 = dma.done.wait (%p424_p1), %s323_s22, 128  }
  0xdc   : > { %576 = vsyncadd (%p424_p1), %s323_s22, 4294967168  ;;  %s20_s19 = sadd.s32 1, %s599_s19   ;;  %s776_s14 = smov %s583_s15 }
  0xdd   : > { %p17_p2 = scmp.ge.s32.totalorder %s20_s19, 4   ;;  %s777_s15 = smov %s587_s16 }
  0xde   : > { %s778_s16 = smov %s682_s27  ;;  %s779_s17 = smov %s595_s18 }
  0xdf   : > { %s780_s18 = smov %s782_s21  ;;  %19 = sbr.rel (!%p17_p2) target bundleno = 8 (0x8), region = 77 }
  0xe4   :  { %329 = vsyncpa [#allocation4], 1 }
  0xe5   :  { %331 = vsyncpa [#allocation4 + $0x1], 1 }
  0xe6   :  { %332 = vsyncpa [#allocation5], 1 }
  0xe7   :  { %334 = vsyncpa [#allocation5 + $0x1], 1 }

</bundles_post_ra>
